<compile_context>
chip_gen: v5e
topology: v5e:2x2
jax: 0.10.0
libtpu: 0.0.40
codegen_flags: <defaults>
</compile_context>

<pallas_src>
import functools

import jax
import jax.numpy as jnp
from jax import lax
from jax.experimental import pallas as pl
from jax.experimental.pallas import tpu as pltpu


def _round_up(x, m):
    return ((x + m - 1) // m) * m


def _pick_rows_per_tile(h, cp1, max_m=1024):
    """Rows of the output image handled per grid step.

    Constraints: divides h; r % 8 == 0 (sublane tile) or r == h; prefer the
    largest r with cp1 * r <= max_m (MXU M-rows per matmul).
    """
    valid = [r for r in range(1, h + 1) if h % r == 0 and (r % 8 == 0 or r == h)]
    fitting = [r for r in valid if cp1 * r <= max_m]
    return max(fitting) if fitting else min(valid)


def _splat_kernel(xyz_ref, feat_ref, out_ref, conf_ref, acc_ref, *,
                  h, w, rows_per_tile, eps, mxu_dtype):
    """One (batch, row-tile, point-chunk) grid step.

    xyz_ref  : (1, 3, pk)        point NDC coords (x, y, z as sublane rows)
    feat_ref : (1, c+1, pk)      features with an appended ones-row (-> conf)
    out_ref  : (1, c, r, w)      normalized splatted features for this row tile
    conf_ref : (1, 1, r, w)      accumulated splat weight for this row tile
    acc_ref  : ((c+1)*r, w) f32  running accumulator over point chunks
    """
    t = pl.program_id(1)
    k = pl.program_id(2)

    @pl.when(k == 0)
    def _():
        acc_ref[...] = jnp.zeros_like(acc_ref)

    xyz = xyz_ref[0]                                   # (3, pk) f32
    x = xyz[0:1, :]                                    # (1, pk)
    y = xyz[1:2, :]
    z = xyz[2:3, :]

    # Visibility: inside the NDC square and in front of the camera.
    vizf = ((x >= -1.0) & (x <= 1.0) &
            (y >= -1.0) & (y <= 1.0) &
            (z > 0.0)).astype(jnp.float32)             # (1, pk)

    # NDC -> pixel coordinates (align_corners=True convention).
    px = (x + 1.0) * (0.5 * (w - 1))                   # (1, pk)
    py = (y + 1.0) * (0.5 * (h - 1))                   # (1, pk)

    # Separable bilinear weights; lane axis = points everywhere (no transposes,
    # no div/mod, no (p, r*w) slab).
    row0 = (t * rows_per_tile).astype(jnp.float32)
    row = (lax.broadcasted_iota(jnp.int32, (rows_per_tile, 1), 0)
           .astype(jnp.float32) + row0)                # (r, 1)
    col = lax.broadcasted_iota(jnp.int32, (w, 1), 0).astype(jnp.float32)  # (w, 1)

    wy = jnp.maximum(1.0 - jnp.abs(py - row), 0.0) * vizf   # (r, pk) f32
    wxt = jnp.maximum(1.0 - jnp.abs(px - col), 0.0)         # (w, pk) f32

    feat = feat_ref[0].astype(jnp.float32)                  # (c+1, pk)
    cp1 = feat.shape[0]

    # Khatri-Rao: fold wy into the features so the matmul M = (c+1)*r.
    tmp = feat[:, None, :] * wy[None, :, :]                 # (c+1, r, pk) f32
    tmp = tmp.reshape(cp1 * rows_per_tile, tmp.shape[-1]).astype(mxu_dtype)

    # acc[m, col] = sum_p tmp[m, p] * wxt[col, p]  -- single MXU matmul, K = pk.
    acc_ref[...] += lax.dot_general(
        tmp, wxt.astype(mxu_dtype),
        dimension_numbers=(((1,), (1,)), ((), ())),
        preferred_element_type=jnp.float32)                 # ((c+1)*r, w)

    @pl.when(k == pl.num_programs(2) - 1)
    def _():
        acc = acc_ref[...].reshape(cp1, rows_per_tile, w)   # (c+1, r, w)
        conf = acc[cp1 - 1:cp1]                             # (1, r, w)
        inv = pl.reciprocal(jnp.maximum(conf, eps), approx=True)   # EUP slot
        out_ref[0] = (acc[:cp1 - 1] * inv).astype(out_ref.dtype)
        conf_ref[0] = conf.astype(conf_ref.dtype)


def splatter_forward(xyz, data, h, w, *, eps=1e-8, rows_per_tile=None,
                     point_chunk=None, mxu_dtype=jnp.bfloat16):
    """Pallas equivalent of Splatter.forward.

    Args:
        xyz  : (bs, p, 3) float — point coordinates in NDC.
        data : (bs, c, p) float — per-point features.
        h, w : static ints — output map size.
    Returns:
        data_map : (bs, c, h, w) float32
        conf_map : (bs, 1, h, w) float32
        viz_mask : (bs, p) bool
    """
    bs, p, _ = xyz.shape
    c = data.shape[1]
    assert xyz.shape[1] == data.shape[2], (
        "ERROR: point cloud size ({:d}) and number of features ({:d}) must "
        "match".format(xyz.shape[1], data.shape[2]))
    cp1 = c + 1

    # ----- VMEM sizing (tighter on 64 MiB parts, larger tiles on 128 MiB) ----
    try:
        cap = int(pltpu.get_tpu_info().vmem_capacity_bytes)
    except Exception:
        cap = 64 * 1024 * 1024                 # conservative (v7x-sized) fallback
    vmem_limit = max(16 * 1024 * 1024, min(cap // 2, 64 * 1024 * 1024))
    budget = (vmem_limit * 3) // 5             # per-step working-set target

    if rows_per_tile is None:
        rows_per_tile = _pick_rows_per_tile(h, cp1)
    r = rows_per_tile
    assert h % r == 0 and (r == h or r % 8 == 0), "bad rows_per_tile"
    n_tiles = h // r

    mxu_bytes = jnp.dtype(mxu_dtype).itemsize
    per_pt = (cp1 * r * (4 + mxu_bytes)            # Khatri-Rao slab (f32 + MXU copy)
              + (r + w) * (4 + mxu_bytes)          # wy / wxT
              + (8 + _round_up(cp1, 8)) * 4 * 2)   # xyz + feat blocks, double-buffered
    fixed = cp1 * r * w * 4 * 3                    # accumulator + output blocks
    pk_max = max(128, (budget - fixed) // per_pt)

    p128 = _round_up(p, 128)
    if point_chunk is not None:
        pk = max(128, (point_chunk // 128) * 128)
    elif pk_max >= p128:
        pk = p128
    else:
        pk = max(128, (int(pk_max) // 128) * 128)
    p_total = _round_up(p128, pk)
    n_k = p_total // pk

    xyz32 = xyz.astype(jnp.float32)
    data32 = data.astype(jnp.float32)

    # (bs, p, 3) -> (bs, 3, p): lane-dense point axis; x/y/z are sublane rows.
    xyz_t = jnp.transpose(xyz32, (0, 2, 1))
    # Append a ones-row so confidence falls out of the same matmul.
    feat_aug = jnp.concatenate([data32, jnp.ones((bs, 1, p), jnp.float32)], axis=1)

    if p_total > p:
        pad = p_total - p
        # zero-padded points have z == 0 -> not visible -> zero splat weight.
        xyz_t = jnp.pad(xyz_t, ((0, 0), (0, 0), (0, pad)))
        feat_aug = jnp.pad(feat_aug, ((0, 0), (0, 0), (0, pad)))

    kernel = functools.partial(_splat_kernel, h=h, w=w, rows_per_tile=r,
                               eps=eps, mxu_dtype=mxu_dtype)

    out, conf = pl.pallas_call(
        kernel,
        out_shape=(
            jax.ShapeDtypeStruct((bs, c, h, w), jnp.float32),
            jax.ShapeDtypeStruct((bs, 1, h, w), jnp.float32),
        ),
        grid_spec=pltpu.PrefetchScalarGridSpec(
            num_scalar_prefetch=0,
            grid=(bs, n_tiles, n_k),
            in_specs=[
                pl.BlockSpec((1, 3, pk), lambda b, t, k: (b, 0, k)),
                pl.BlockSpec((1, cp1, pk), lambda b, t, k: (b, 0, k)),
            ],
            out_specs=[
                pl.BlockSpec((1, c, r, w), lambda b, t, k: (b, 0, t, 0)),
                pl.BlockSpec((1, 1, r, w), lambda b, t, k: (b, 0, t, 0)),
            ],
            scratch_shapes=[pltpu.VMEM((cp1 * r, w), jnp.float32)],
        ),
        compiler_params=pltpu.CompilerParams(
            dimension_semantics=("parallel", "parallel", "arbitrary"),
            vmem_limit_bytes=int(vmem_limit)),
    )(xyz_t, feat_aug)

    # viz computed outside the kernel: a (p, 1) output block would be a
    # lane-sparse masked store + an extra DMA per grid step.
    viz_mask = ((jnp.abs(xyz32[..., 0]) <= 1.0) &
                (jnp.abs(xyz32[..., 1]) <= 1.0) &
                (xyz32[..., 2] > 0.0))
    return out, conf, viz_mask


def _reference(xyz, data, h, w, eps=1e-8):
    """Pure-jnp reference with the same assumed splatting semantics."""
    x, y, z = xyz[..., 0], xyz[..., 1], xyz[..., 2]
    viz = (jnp.abs(x) <= 1.0) & (jnp.abs(y) <= 1.0) & (z > 0.0)
    px = (x + 1.0) * (0.5 * (w - 1))
    py = (y + 1.0) * (0.5 * (h - 1))
    col = jnp.arange(w, dtype=jnp.float32)
    row = jnp.arange(h, dtype=jnp.float32)
    wx = jnp.maximum(1.0 - jnp.abs(px[..., None] - col), 0.0)        # (bs,p,w)
    wy = jnp.maximum(1.0 - jnp.abs(py[..., None] - row), 0.0)
    wy = wy * viz[..., None].astype(jnp.float32)                     # (bs,p,h)
    wgt = wy[:, :, :, None] * wx[:, :, None, :]                      # (bs,p,h,w)
    conf = jnp.sum(wgt, axis=1)[:, None]                             # (bs,1,h,w)
    dmap = jnp.einsum('bcp,bphw->bchw', data, wgt) / jnp.maximum(conf, eps)
    return dmap, conf, viz


if __name__ == "__main__":
    key = jax.random.PRNGKey(0)

    def run_case(bs, p, c, h, w, k, **kw):
        k_xy, k_z, k_dat = jax.random.split(k, 3)
        # xy slightly outside [-1, 1] and z straddling 0 -> some invisible points
        xy = jax.random.uniform(k_xy, (bs, p, 2), minval=-1.2, maxval=1.2)
        z = jax.random.uniform(k_z, (bs, p, 1), minval=-0.3, maxval=1.0)
        xyz = jnp.concatenate([xy, z], axis=-1).astype(jnp.float32)
        data = jax.random.normal(k_dat, (bs, c, p), dtype=jnp.float32)

        ref_map, ref_conf, ref_viz = _reference(xyz, data, h, w)
        dmap, conf, viz = splatter_forward(xyz, data, h, w, **kw)
        jax.block_until_ready((dmap, conf, viz))

        assert dmap.shape == (bs, c, h, w)
        assert conf.shape == (bs, 1, h, w)
        assert viz.shape == (bs, p) and viz.dtype == jnp.bool_
        assert bool(jnp.all(viz == ref_viz))
        assert bool(jnp.allclose(dmap, ref_map, rtol=5e-2, atol=1e-1))
        assert bool(jnp.allclose(conf, ref_conf, rtol=5e-2, atol=1e-1))

    k1, k2, k3 = jax.random.split(key, 3)
    # default tiling: single row tile, single point chunk
    run_case(2, 256, 4, 16, 16, k1)
    # forced row tiling + point chunking (exercises the pl.when accumulator path)
    run_case(2, 256, 4, 16, 16, k2, rows_per_tile=8, point_chunk=128)
    # p not a multiple of 128 (exercises zero-padding of the point axis)
    run_case(1, 200, 3, 8, 24, k3, point_chunk=128)

    print("KERNEL_OK")
</pallas_src>

<mosaic_0001>
module attributes {stable_mosaic.version = 11 : i64} {
  func.func @_splat_kernel(%arg0: i32, %arg1: i32, %arg2: i32, %arg3: memref<1x3x256xf32, #tpu.memory_space<vmem>>, %arg4: memref<1x5x256xf32, #tpu.memory_space<vmem>>, %arg5: memref<1x4x16x16xf32, #tpu.memory_space<vmem>>, %arg6: memref<1x1x16x16xf32, #tpu.memory_space<vmem>>, %arg7: memref<80x16xf32, #tpu.memory_space<vmem>>) attributes {dimension_semantics = [#tpu.dimension_semantics<parallel>, #tpu.dimension_semantics<parallel>, #tpu.dimension_semantics<arbitrary>], iteration_bounds = array<i64: 2, 1, 1>, scalar_prefetch = 0 : i64, scratch_operands = 1 : i64, tpu.core_type = #tpu.core_type<tc>, window_params = [{transform_indices = @transform_0, window_bounds = array<i64: 1, 3, 256>}, {transform_indices = @transform_1, window_bounds = array<i64: 1, 5, 256>}, {transform_indices = @transform_2, window_bounds = array<i64: 1, 4, 16, 16>}, {transform_indices = @transform_3, window_bounds = array<i64: 1, 1, 16, 16>}]} {
    %c0_i32 = arith.constant 0 : i32
    %0 = arith.cmpi eq, %arg2, %c0_i32 : i32
    %1 = arith.extui %0 : i1 to i32
    %c0_i32_0 = arith.constant 0 : i32
    %2 = arith.cmpi ne, %1, %c0_i32_0 : i32
    scf.if %2 {
      %cst_25 = arith.constant 0.000000e+00 : f32
      %75 = vector.broadcast %cst_25 : f32 to vector<80x16xf32>
      %c0_26 = arith.constant 0 : index
      %c0_27 = arith.constant 0 : index
      %76 = vector.load %arg7[%c0_26, %c0_27] : memref<80x16xf32, #tpu.memory_space<vmem>>, vector<80x16xf32>
      tpu.vector_store %arg7[%c0_26, %c0_27], %75 {strides = array<i32>} : memref<80x16xf32, #tpu.memory_space<vmem>>, vector<80x16xf32>,
    } else {
    }
    %c0 = arith.constant 0 : index
    %c0_1 = arith.constant 0 : index
    %c0_2 = arith.constant 0 : index
    %3 = vector.load %arg3[%c0, %c0_1, %c0_2] : memref<1x3x256xf32, #tpu.memory_space<vmem>>, vector<1x3x256xf32>
    %4 = vector.shape_cast %3 : vector<1x3x256xf32> to vector<3x256xf32>
    %5 = vector.extract_strided_slice %4 {offsets = [0, 0], sizes = [1, 256], strides = [1, 1]} : vector<3x256xf32> to vector<1x256xf32>
    %6 = vector.extract_strided_slice %4 {offsets = [1, 0], sizes = [1, 256], strides = [1, 1]} : vector<3x256xf32> to vector<1x256xf32>
    %7 = vector.extract_strided_slice %4 {offsets = [2, 0], sizes = [1, 256], strides = [1, 1]} : vector<3x256xf32> to vector<1x256xf32>
    %cst = arith.constant -1.000000e+00 : f32
    %8 = vector.broadcast %cst : f32 to vector<1x256xf32>
    %9 = arith.cmpf oge, %5, %8 : vector<1x256xf32>
    %cst_3 = arith.constant 1.000000e+00 : f32
    %10 = vector.broadcast %cst_3 : f32 to vector<1x256xf32>
    %11 = arith.cmpf ole, %5, %10 : vector<1x256xf32>
    %12 = arith.andi %9, %11 : vector<1x256xi1>
    %cst_4 = arith.constant -1.000000e+00 : f32
    %13 = vector.broadcast %cst_4 : f32 to vector<1x256xf32>
    %14 = arith.cmpf oge, %6, %13 : vector<1x256xf32>
    %15 = arith.andi %12, %14 : vector<1x256xi1>
    %cst_5 = arith.constant 1.000000e+00 : f32
    %16 = vector.broadcast %cst_5 : f32 to vector<1x256xf32>
    %17 = arith.cmpf ole, %6, %16 : vector<1x256xf32>
    %18 = arith.andi %15, %17 : vector<1x256xi1>
    %cst_6 = arith.constant 0.000000e+00 : f32
    %19 = vector.broadcast %cst_6 : f32 to vector<1x256xf32>
    %20 = arith.cmpf ogt, %7, %19 : vector<1x256xf32>
    %21 = arith.andi %18, %20 : vector<1x256xi1>
    %22 = arith.extui %21 : vector<1x256xi1> to vector<1x256xi32>
    %23 = arith.sitofp %22 : vector<1x256xi32> to vector<1x256xf32>
    %cst_7 = arith.constant 1.000000e+00 : f32
    %24 = vector.broadcast %cst_7 : f32 to vector<1x256xf32>
    %25 = arith.addf %5, %24 : vector<1x256xf32>
    %cst_8 = arith.constant 7.500000e+00 : f32
    %26 = vector.broadcast %cst_8 : f32 to vector<1x256xf32>
    %27 = arith.mulf %25, %26 : vector<1x256xf32>
    %cst_9 = arith.constant 1.000000e+00 : f32
    %28 = vector.broadcast %cst_9 : f32 to vector<1x256xf32>
    %29 = arith.addf %6, %28 : vector<1x256xf32>
    %cst_10 = arith.constant 7.500000e+00 : f32
    %30 = vector.broadcast %cst_10 : f32 to vector<1x256xf32>
    %31 = arith.mulf %29, %30 : vector<1x256xf32>
    %c16_i32 = arith.constant 16 : i32
    %32 = arith.muli %arg1, %c16_i32 : i32
    %33 = arith.sitofp %32 : i32 to f32
    %34 = tpu.iota {dimensions = array<i32: 0>} : vector<16x1xi32>
    %35 = arith.sitofp %34 : vector<16x1xi32> to vector<16x1xf32>
    %36 = vector.broadcast %33 : f32 to vector<16x1xf32>
    %37 = arith.addf %35, %36 : vector<16x1xf32>
    %38 = tpu.iota {dimensions = array<i32: 0>} : vector<16x1xi32>
    %39 = arith.sitofp %38 : vector<16x1xi32> to vector<16x1xf32>
    %40 = vector.broadcast %31 : vector<1x256xf32> to vector<16x256xf32>
    %41 = vector.broadcast %37 : vector<16x1xf32> to vector<16x256xf32>
    %42 = arith.subf %40, %41 : vector<16x256xf32>
    %43 = math.absf %42 : vector<16x256xf32>
    %cst_11 = arith.constant 1.000000e+00 : f32
    %44 = vector.broadcast %cst_11 : f32 to vector<16x256xf32>
    %45 = arith.subf %44, %43 : vector<16x256xf32>
    %cst_12 = arith.constant 0.000000e+00 : f32
    %46 = vector.broadcast %cst_12 : f32 to vector<16x256xf32>
    %47 = arith.maximumf %45, %46 : vector<16x256xf32>
    %48 = vector.broadcast %23 : vector<1x256xf32> to vector<16x256xf32>
    %49 = arith.mulf %47, %48 : vector<16x256xf32>
    %50 = vector.broadcast %27 : vector<1x256xf32> to vector<16x256xf32>
    %51 = vector.broadcast %39 : vector<16x1xf32> to vector<16x256xf32>
    %52 = arith.subf %50, %51 : vector<16x256xf32>
    %53 = math.absf %52 : vector<16x256xf32>
    %cst_13 = arith.constant 1.000000e+00 : f32
    %54 = vector.broadcast %cst_13 : f32 to vector<16x256xf32>
    %55 = arith.subf %54, %53 : vector<16x256xf32>
    %cst_14 = arith.constant 0.000000e+00 : f32
    %56 = vector.broadcast %cst_14 : f32 to vector<16x256xf32>
    %57 = arith.maximumf %55, %56 : vector<16x256xf32>
    %c0_15 = arith.constant 0 : index
    %c0_16 = arith.constant 0 : index
    %c0_17 = arith.constant 0 : index
    %58 = vector.load %arg4[%c0_15, %c0_16, %c0_17] : memref<1x5x256xf32, #tpu.memory_space<vmem>>, vector<1x5x256xf32>
    %59 = vector.shape_cast %58 : vector<1x5x256xf32> to vector<5x256xf32>
    %60 = vector.shape_cast %59 : vector<5x256xf32> to vector<5x1x256xf32>
    %61 = vector.shape_cast %49 : vector<16x256xf32> to vector<1x16x256xf32>
    %62 = vector.broadcast %60 : vector<5x1x256xf32> to vector<5x16x256xf32>
    %63 = vector.broadcast %61 : vector<1x16x256xf32> to vector<5x16x256xf32>
    %64 = arith.mulf %62, %63 : vector<5x16x256xf32>
    %65 = vector.shape_cast %64 : vector<5x16x256xf32> to vector<80x256xf32>
    %66 = arith.truncf %65 : vector<80x256xf32> to vector<80x256xbf16>
    %c0_18 = arith.constant 0 : index
    %c0_19 = arith.constant 0 : index
    %67 = vector.load %arg7[%c0_18, %c0_19] : memref<80x16xf32, #tpu.memory_space<vmem>>, vector<80x16xf32>
    %68 = arith.truncf %57 : vector<16x256xf32> to vector<16x256xbf16>
    %cst_20 = arith.constant dense<0.000000e+00> : vector<80x16xf32>
    %69 = tpu.matmul %66, %68, %cst_20 {dimension_numbers = #tpu.dot_dimension_numbers<[1], [1], [0], [0], [0, 0, 1, 0], [], []>} : vector<80x256xbf16>, vector<16x256xbf16>, vector<80x16xf32> -> vector<80x16xf32>
    %70 = arith.addf %67, %69 : vector<80x16xf32>
    %c0_21 = arith.constant 0 : index
    %c0_22 = arith.constant 0 : index
    %71 = vector.load %arg7[%c0_21, %c0_22] : memref<80x16xf32, #tpu.memory_space<vmem>>, vector<80x16xf32>
    tpu.vector_store %arg7[%c0_21, %c0_22], %70 {strides = array<i32>} : memref<80x16xf32, #tpu.memory_space<vmem>>, vector<80x16xf32>,
    %c0_i32_23 = arith.constant 0 : i32
    %72 = arith.cmpi eq, %arg2, %c0_i32_23 : i32
    %73 = arith.extui %72 : i1 to i32
    %c0_i32_24 = arith.constant 0 : i32
    %74 = arith.cmpi ne, %73, %c0_i32_24 : i32
    scf.if %74 {
      %c0_25 = arith.constant 0 : index
      %c0_26 = arith.constant 0 : index
      %75 = vector.load %arg7[%c0_25, %c0_26] : memref<80x16xf32, #tpu.memory_space<vmem>>, vector<80x16xf32>
      %76 = vector.shape_cast %75 : vector<80x16xf32> to vector<5x16x16xf32>
      %77 = vector.extract_strided_slice %76 {offsets = [4, 0, 0], sizes = [1, 16, 16], strides = [1, 1, 1]} : vector<5x16x16xf32> to vector<1x16x16xf32>
      %cst_27 = arith.constant 9.99999993E-9 : f32
      %78 = vector.broadcast %cst_27 : f32 to vector<1x16x16xf32>
      %79 = arith.maximumf %77, %78 : vector<1x16x16xf32>
      %80 = tpu.reciprocal %79 {approx = true} : vector<1x16x16xf32> -> vector<1x16x16xf32>
      %81 = vector.extract_strided_slice %76 {offsets = [0, 0, 0], sizes = [4, 16, 16], strides = [1, 1, 1]} : vector<5x16x16xf32> to vector<4x16x16xf32>
      %82 = vector.broadcast %80 : vector<1x16x16xf32> to vector<4x16x16xf32>
      %83 = arith.mulf %81, %82 : vector<4x16x16xf32>
      %c0_28 = arith.constant 0 : index
      %c0_29 = arith.constant 0 : index
      %c0_30 = arith.constant 0 : index
      %c0_31 = arith.constant 0 : index
      %84 = vector.load %arg5[%c0_28, %c0_29, %c0_30, %c0_31] : memref<1x4x16x16xf32, #tpu.memory_space<vmem>>, vector<1x4x16x16xf32>
      %85 = vector.shape_cast %84 : vector<1x4x16x16xf32> to vector<4x16x16xf32>
      %86 = vector.shape_cast %83 : vector<4x16x16xf32> to vector<1x4x16x16xf32>
      tpu.vector_store %arg5[%c0_28, %c0_29, %c0_30, %c0_31], %86 {strides = array<i32>} : memref<1x4x16x16xf32, #tpu.memory_space<vmem>>, vector<1x4x16x16xf32>,
      %c0_32 = arith.constant 0 : index
      %c0_33 = arith.constant 0 : index
      %c0_34 = arith.constant 0 : index
      %c0_35 = arith.constant 0 : index
      %87 = vector.load %arg6[%c0_32, %c0_33, %c0_34, %c0_35] : memref<1x1x16x16xf32, #tpu.memory_space<vmem>>, vector<1x1x16x16xf32>
      %88 = vector.shape_cast %87 : vector<1x1x16x16xf32> to vector<1x16x16xf32>
      %89 = vector.shape_cast %77 : vector<1x16x16xf32> to vector<1x1x16x16xf32>
      tpu.vector_store %arg6[%c0_32, %c0_33, %c0_34, %c0_35], %89 {strides = array<i32>} : memref<1x1x16x16xf32, #tpu.memory_space<vmem>>, vector<1x1x16x16xf32>,
    } else {
    }
    return
  }
  func.func @transform_0(%arg0: i32, %arg1: i32, %arg2: i32) -> (i32, i32, i32) {
    %c0_i32 = arith.constant 0 : i32
    %c0_i32_0 = arith.constant 0 : i32
    return %arg0, %c0_i32, %arg2 : i32, i32, i32
  }
  func.func @transform_1(%arg0: i32, %arg1: i32, %arg2: i32) -> (i32, i32, i32) {
    %c0_i32 = arith.constant 0 : i32
    %c0_i32_0 = arith.constant 0 : i32
    return %arg0, %c0_i32, %arg2 : i32, i32, i32
  }
  func.func @transform_2(%arg0: i32, %arg1: i32, %arg2: i32) -> (i32, i32, i32, i32) {
    %c0_i32 = arith.constant 0 : i32
    %c0_i32_0 = arith.constant 0 : i32
    %c0_i32_1 = arith.constant 0 : i32
    return %arg0, %c0_i32, %arg1, %c0_i32_0 : i32, i32, i32, i32
  }
  func.func @transform_3(%arg0: i32, %arg1: i32, %arg2: i32) -> (i32, i32, i32, i32) {
    %c0_i32 = arith.constant 0 : i32
    %c0_i32_0 = arith.constant 0 : i32
    %c0_i32_1 = arith.constant 0 : i32
    return %arg0, %c0_i32, %arg1, %c0_i32_0 : i32, i32, i32, i32
  }
}

</mosaic_0001>

<bundles_post_ra>
// kernel: tpu_custom_call.1
= control target key start
LH: loop header
LB: loop body
LE: loop exit
PB: predicated region body
PF: predicated region fallthrough
CT: control target
= control target key end

     0   :  { %9 = vsyncpa [#allocation4], 0  ;;  %s1192_s0 = inlined_call_operand.vmem [shape: f32[2,3,256], index: 0, kind: input, shape index: {}]   ;;  %s1193_s1 = inlined_call_operand.vmem [shape: f32[2,5,256], index: 1, kind: input, shape index: {}]   ;;  %s1194_s2 = inlined_call_operand.hbm [shape: f32[2,4,16,16], index: 2, kind: output, shape index: {0}]   ;;  %s1195_s3 = inlined_call_operand.hbm [shape: f32[2,1,16,16], index: 3, kind: output, shape index: {1}]  }
   0x1   :  { %11 = vsyncpa [#allocation4 + $0x1], 0 }
   0x2   :  { %12 = vsyncpa [#allocation6], 0 }
   0x3   :  { %14 = vsyncpa [#allocation6 + $0x1], 0  ;;  %s979_s12 = smov 0   ;;  %s981_s13 = smov 0  }
   0x4   :  { %s983_s14 = smov 0   ;;  %s985_s15 = smov 0  }
   0x5   :  { %s987_s16 = smov 0   ;;  %s989_s17 = smov 0  }
   0x6 LB: > { %s746_s18 = sadd.s32 4294967295, %s953_s17   ;;  %s747_s19 = sadd.s32 4294967294, %s953_s17   ;;  %s953_s17 = sphi %s989_s17, %s20_s17   ;;  %s949_s16 = sphi %s987_s16, %s1206_s16   ;;  %s945_s15 = sphi %s985_s15, %s1205_s15   ;;  %s941_s14 = sphi %s983_s14, %s1204_s14   ;;  %s937_s13 = sphi %s981_s13, %s1203_s13   ;;  %s933_s12 = sphi %s979_s12, %s1202_s12  }
   0x7   : > { %s39_s20 = sadd.s32 1, %s949_s16  ;;  %s104_s21 = sadd.s32 1, %s941_s14 }
   0x8   : > { %p41_p0 = scmp.ge.s32.totalorder %s39_s20, 2  ;;  %p114_p1 = scmp.ne.s32.totalorder %s941_s14, %s937_s13 }
   0x9   : > { %p115_p2 = scmp.eq.s32.totalorder %s746_s18, 1  ;;  %p120_p3 = scmp.ne.s32.totalorder %s937_s13, %s933_s12 }
   0xa   : > { %s1208_s20 = smov (%p41_p0, %s39_s20), 0  ;;  %p121_p5 = scmp.eq.s32.totalorder %s747_s19, 1 }
   0xb   : > { %p1019_p4 = por %p115_p2, %p114_p1  ;;  %s99_s23 = ssub.s32 %s949_s16, %s1208_s20 }
   0xc   : > { %p750_p6 = scmp.ge.s32.totalorder %s953_s17, 1  ;;  %p102_p7 = scmp.eq.s32.totalorder %s99_s23, 0 }
   0xd   : > { %p1026_p8 = por %p121_p5, %p120_p3  ;;  %p193_p9 = scmp.lt.s32.totalorder %s953_s17, 3 }
   0xe   : > { %s1032_s25 = scalar_select %p102_p7, %s941_s14, %s104_s21  }
   0xf   : > { %p194_p10 = pnand %p750_p6, %p193_p9 }
  0x10   : > { %p236_p11 = scmp.lt.s32.totalorder (!%p194_p10), %s945_s15, 1  ;;  %s1107_s8 = sand.u32 (!%p194_p10), 1, %s937_s13  }
  0x11   : > { %197 = sbr.rel (%p194_p10) target bundleno = 242 (0xf2), region = 28  ;;  %s752_s9 = sshll.u32 (!%p194_p10), %s1107_s8, 4 }
  0x12   : > { %s772_s10 = sshll.u32 (!%p194_p10), %s945_s15, 4  ;;  %s234_s21 = scalar_lea.vmem (!%p194_p10), [#allocation5], %s752_s9 }
  0x13   : > { %s606_s19 = scalar_lea.hbm (!%p194_p10), %s1195_s3, %s772_s10  ;;  %s607_s23 = sshll.u32 (!%p194_p10), %s234_s21, 4  ;;  %s1119_s23 = int_to_ptr.vmem [resolvable:$true] %s607_s23 }
  0x14   : > { %s863_s6 = scalar_lea.hbm (!%p194_p10), %s1195_s3, 32 }
  0x16   : > { %v299_v0 = vlaneseq  ;;  %s237_s26 = scalar_select %p236_p11, %s945_s15, 1  ;;  %vm368_vm0 = vcmask 1040384   ;;  %vm376_vm1 = vcmask 1043459   ;;  %v955_v7 = vmov 0  }
  0x17   : > { %v956_v36 = vmov 0.0   ;;  %vm370_vm12 = vcmask 1041409   ;;  %vm379_vm13 = vcmask 1044484   ;;  %vm373_vm14 = vcmask 1042434  }
  0x18   : > { %v300_v1 = vshrl.u32 %v299_v0, 7  ;;  %s769_s27 = sshll.u32 %s237_s26, 3  ;;  %s770_s28 = sshll.u32 %s237_s26, 4  ;;  %vm262_vm15 = vcmask 130048  }
  0x19   : > { %s243_s4 = scalar_lea.vmem %s1192_s0, %s769_s27  ;;  %s253_s7 = scalar_lea.vmem %s1193_s1, %s770_s28  ;;  %263 = vst.msk [vmem:[#allocation2] sm:$0xff] %vm262_vm15, %v956_v36 }
  0x1a   : > { %v273_v2 = vld [vmem:[%s243_s4] sm:$0x77]  ;;  %v301_v3 = vadd.s32 8, %v300_v1  ;;  %v364_v4 = vld [vmem:[%s253_s7 + $0x8] sm:$0x1f]  ;;  %v302_v17 = vcvt.s32.f32 %v300_v1  ;;  %264 = vst.msk [vmem:[#allocation2 + $0x8] sm:$0xff] %vm262_vm15, %v956_v36 }
  0x1b   : > { %vm274_vm2 = vcmp.ge.f32.partialorder %v273_v2, -1.0  ;;  %vm275_vm3 = vcmp.le.f32.partialorder %v273_v2, 1.0  ;;  %v295_v5 = vadd.f32 1.0, %v273_v2  ;;  %vm287_vm4 = vcmp.gt.f32.partialorder %v273_v2, 0.0  ;;  %v1042_v6 = vld [vmem:[%s253_s7] sm:$0x1f] }
  0x1c   : > { %v277_v8 = vsel %vm274_vm2, 1, %v955_v7  ;;  %v282_v9 = vsel %vm275_vm3, 1, %v955_v7  ;;  %v288_v10 = vsel %vm287_vm4, 1, %v955_v7  ;;  %v1044_v11 = vrot.slane %v364_v4, 7  ;;  %vm1046_vm5 = vmand %vm274_vm2, %vm275_vm3  ;;  %265 = vst.msk [vmem:[#allocation2 + $0x10] sm:$0xff] %vm262_vm15, %v956_v36  ;;  %s609_s26 = sshll.u32 %s606_s19, 4  ;;  %s1121_s26 = int_to_ptr.hbm [resolvable:$true] %s609_s26 }
  0x1d   : > { %v296_v12 = vmul.f32 7.5, %v295_v5  ;;  %v757_v14 = vrot.slane %v277_v8, 9  ;;  %v758_v15 = vrot.slane %v282_v9, 9  ;;  %v759_v16 = vrot.slane %v288_v10, 10  ;;  %266 = vst.msk [vmem:[#allocation2 + $0x18] sm:$0xff] %vm262_vm15, %v956_v36  ;;  %s751_s27 = sshll.u32 %s1107_s8, 6 }
  0x1e   : > { %v303_v18 = vcvt.s32.f32 %v301_v3  ;;  %v1053_v19 = vsel %vm368_vm0, %v1042_v6, %v1044_v11  ;;  %v1058_v20 = vsel %vm376_vm1, %v1042_v6, %v1044_v11  ;;  %267 = vst.msk [vmem:[#allocation2 + $0x20] sm:$0xff] %vm262_vm15, %v956_v36  ;;  %s574_s28 = scalar_lea.sflag [#allocation6], %s1107_s8  ;;  %s857_s29 = sshra.s32 %s1121_s26, 4  ;;  %s858_s29 = int_to_ptr.hbm [resolvable:$true] %s857_s29 }
  0x1f   : > { %v341_v21 = vperm.slane %v296_v12, 0  ;;  %v342_v22 = vperm.slane %v296_v12, 4  ;;  %vm280_vm6 = vcmp.ne.s32.totalorder %v757_v14, 0  ;;  %vm285_vm7 = vcmp.ne.s32.totalorder %v758_v15, 0  ;;  %268 = vst.msk [vmem:[#allocation2 + $0x28] sm:$0xff] %vm262_vm15, %v956_v36  ;;  %s859_s30 = scalar_lea.hbm %s858_s29, 16  ;;  %p864_p1 = scmp.lt.s32.totalorder %s858_s29, %s1195_s3 }
  0x20   : > { %vm281_vm8 = vmand %vm1046_vm5, %vm280_vm6  ;;  %vm1062_vm9 = vcmp.ne.s32.totalorder %v759_v16, 0  ;;  %v308_v24 = vperm.slane %v296_v12, 1  ;;  %v378_v25 = vrot.slane %v1058_v20, 3  ;;  %v309_v28 = vperm.slane %v296_v12, 5  ;;  %269 = vst.msk [vmem:[#allocation2 + $0x30] sm:$0xff] %vm262_vm15, %v956_v36  ;;  %p860_p12 = scmp.ne.s32.totalorder %s858_s29, %s859_s30  ;;  %p865_p2 = scmp.lt.s32.totalorder %s863_s6, %s859_s30 }
  0x21   : > { %v345_v26 = vperm.slane %v341_v21, 0  ;;  %v346_v27 = vperm.slane %v342_v22, 0  ;;  %vm286_vm10 = vmand %vm281_vm8, %vm285_vm7  ;;  %v382_v30 = vperm.slane %v1053_v19, 0  ;;  %v383_v10 = vperm.slane %v1053_v19, 1  ;;  %270 = vst.msk [vmem:[#allocation2 + $0x38] sm:$0xff] %vm262_vm15, %v956_v36 }
  0x22   : > { %vm292_vm11 = vmand %vm286_vm10, %vm1062_vm9  ;;  %v312_v29 = vperm.slane %v308_v24, 1  ;;  %v388_v31 = vperm.slane %v378_v25, 0  ;;  %v313_v40 = vperm.slane %v309_v28, 1  ;;  %v389_v12 = vperm.slane %v378_v25, 1  ;;  %271 = vst.msk [vmem:[#allocation2 + $0x40] sm:$0xff] %vm262_vm15, %v956_v36  ;;  %p861_p13 = pnand %p860_p12, %p1019_p4  ;;  %p866_p3 = por %p865_p2, %p864_p1 }
  0x23   : > { %v347_v32 = vsub.f32 %v345_v26, %v302_v17  ;;  %v349_v33 = vsub.f32 %v345_v26, %v303_v18  ;;  %v348_v34 = vsub.f32 %v346_v27, %v302_v17  ;;  %v350_v35 = vsub.f32 %v346_v27, %v303_v18  ;;  %272 = vst.msk [vmem:[#allocation2 + $0x48] sm:$0xff] %vm262_vm15, %v956_v36 }
  0x24   : > { %v760_v37 = vsel %vm292_vm11, 1.0, %v956_v36  ;;  %v314_v38 = vsub.f32 %v312_v29, %v302_v17  ;;  %v316_v39 = vsub.f32 %v312_v29, %v303_v18  ;;  %v315_v47 = vsub.f32 %v313_v40, %v302_v17  ;;  %p862_p0 = pneg %p861_p13 }
  0x25   : > { %v351_v41 = vand.u32 2147483647, %v347_v32  ;;  %v353_v42 = vand.u32 2147483647, %v349_v33  ;;  %v352_v43 = vand.u32 2147483647, %v348_v34  ;;  %v317_v55 = vsub.f32 %v313_v40, %v303_v18 }
  0x26   : > { %v354_v44 = vand.u32 2147483647, %v350_v35  ;;  %v318_v45 = vand.u32 2147483647, %v314_v38  ;;  %v320_v46 = vand.u32 2147483647, %v316_v39  ;;  %v371_v24 = vsel %vm370_vm12, %v1042_v6, %v1044_v11  ;;  %p867_p5 = pnand %p866_p3, %p862_p0 }
  0x27   : > { %v355_v48 = vsub.f32 1.0, %v351_v41  ;;  %v357_v49 = vsub.f32 1.0, %v353_v42  ;;  %v356_v50 = vsub.f32 1.0, %v352_v43  ;;  %v331_v51 = vperm.slane %v760_v37, 0 }
  0x28   : > { %v358_v52 = vsub.f32 1.0, %v354_v44  ;;  %v322_v53 = vsub.f32 1.0, %v318_v45  ;;  %v324_v54 = vsub.f32 1.0, %v320_v46  ;;  %v319_v63 = vand.u32 2147483647, %v315_v47 }
  0x29   : > { %v359_v56 = vmax.f32 %v355_v48, 0.0  ;;  %v361_v57 = vmax.f32 %v357_v49, 0.0  ;;  %v360_v58 = vmax.f32 %v356_v50, 0.0  ;;  %v335_v59 = vperm.slane %v331_v51, 0 }
  0x2a   : > { %v362_v60 = vmax.f32 %v358_v52, 0.0  ;;  %v326_v61 = vmax.f32 %v322_v53, 0.0  ;;  %v328_v62 = vmax.f32 %v324_v54, 0.0  ;;  %v321_v1 = vand.u32 2147483647, %v317_v55 }
  0x2b   : > { %v442_v0 = vpack.c.bf16 %v361_v57, %v359_v56  ;;  %v332_v2 = vperm.slane %v760_v37, 4  ;;  %v323_v7 = vsub.f32 1.0, %v319_v63  ;;  %v380_v19 = vsel %vm379_vm13, %v1042_v6, %v1044_v11 }
  0x2c   : > { %v443_v3 = vpack.c.bf16 %v362_v60, %v360_v58  ;;  %v337_v4 = vmul.f32 %v335_v59, %v326_v61  ;;  %v339_v5 = vmul.f32 %v335_v59, %v328_v62  ;;  %v325_v8 = vsub.f32 1.0, %v321_v1  ;;  %v438_v1 = vld [vmem:[#allocation2 + $0x30] sm:$0xff] }
  0x2d   : > { %451 = vmatpush.bf16.xpose.msra.mxu0 %v442_v0  ;;  %773 = vmatpush.bf16.xpose.msra.mxu2 %v442_v0  ;;  %v336_v9 = vperm.slane %v332_v2, 0  ;;  %v327_v16 = vmax.f32 %v323_v7, 0.0  ;;  %v372_v29 = vrot.slane %v371_v24, 1  ;;  %v374_v48 = vsel %vm373_vm14, %v1042_v6, %v1044_v11  ;;  %v432_v11 = vld [vmem:[#allocation2] sm:$0xff] }
  0x2e   : > { %485 = vmatpush.bf16.xpose.msra.mxu1 %v443_v3  ;;  %774 = vmatpush.bf16.xpose.msra.mxu3 %v443_v3  ;;  %v402_v13 = vmul.f32 %v382_v30, %v337_v4  ;;  %v404_v14 = vmul.f32 %v382_v30, %v339_v5  ;;  %v414_v15 = vmul.f32 %v388_v31, %v337_v4  ;;  %v329_v18 = vmax.f32 %v325_v8, 0.0 }
  0x2f   : > { %v416_v17 = vmul.f32 %v388_v31, %v339_v5  ;;  %v338_v21 = vmul.f32 %v336_v9, %v327_v16  ;;  %v381_v30 = vrot.slane %v380_v19, 4  ;;  %v384_v33 = vperm.slane %v372_v29, 0 }
  0x30   : > { %v422_v20 = vpack.c.bf16 %v404_v14, %v402_v13  ;;  %v340_v23 = vmul.f32 %v336_v9, %v329_v18  ;;  %v385_v35 = vperm.slane %v372_v29, 1  ;;  %v375_v51 = vrot.slane %v374_v48, 2 }
  0x31   : > { %v428_v22 = vpack.c.bf16 %v416_v17, %v414_v15  ;;  %v403_v25 = vmul.f32 %v383_v10, %v338_v21  ;;  %v415_v26 = vmul.f32 %v389_v12, %v338_v21  ;;  %v390_v34 = vperm.slane %v381_v30, 0  ;;  %v434_v15 = vld [vmem:[#allocation2 + $0x10] sm:$0xff] }
  0x32   : > { %v405_v27 = vmul.f32 %v383_v10, %v340_v23  ;;  %v417_v28 = vmul.f32 %v389_v12, %v340_v23  ;;  %v391_v37 = vperm.slane %v381_v30, 1  ;;  %v406_v38 = vmul.f32 %v384_v33, %v337_v4  ;;  %v439_v12 = vld [vmem:[#allocation2 + $0x38] sm:$0xff] }
  0x33   : > { %v408_v39 = vmul.f32 %v384_v33, %v339_v5  ;;  %v418_v40 = vmul.f32 %v390_v34, %v337_v4  ;;  %v420_v41 = vmul.f32 %v390_v34, %v339_v5  ;;  %v407_v42 = vmul.f32 %v385_v35, %v338_v21 }
  0x34   : > { %452 = vmatmul.bf16.vlgmr.msra.gmra.mxu0 %v422_v20  ;;  %467 = vmatmul.bf16.vlgmr.msra.gmra.mxu2 %v428_v22  ;;  %v423_v31 = vpack.c.bf16 %v405_v27, %v403_v25  ;;  %v429_v32 = vpack.c.bf16 %v417_v28, %v415_v26  ;;  %v409_v43 = vmul.f32 %v385_v35, %v340_v23  ;;  %v386_v52 = vperm.slane %v375_v51, 0  ;;  %v435_v25 = vld [vmem:[#allocation2 + $0x18] sm:$0xff]  ;;  %v436_v35 = vld [vmem:[#allocation2 + $0x20] sm:$0xff] }
  0x35   : > { %v419_v44 = vmul.f32 %v391_v37, %v338_v21  ;;  %v421_v45 = vmul.f32 %v391_v37, %v340_v23  ;;  %v424_v46 = vpack.c.bf16 %v408_v39, %v406_v38  ;;  %v430_v47 = vpack.c.bf16 %v420_v41, %v418_v40 }
  0x36   : > { %486 = vmatmul.bf16.vlgmr.msra.gmra.mxu1 %v423_v31  ;;  %501 = vmatmul.bf16.vlgmr.msra.gmra.mxu3 %v429_v32  ;;  %v425_v49 = vpack.c.bf16 %v409_v43, %v407_v42  ;;  %v387_v53 = vperm.slane %v375_v51, 1  ;;  %v410_v54 = vmul.f32 %v386_v52, %v337_v4  ;;  %v412_v55 = vmul.f32 %v386_v52, %v339_v5  ;;  %v433_v4 = vld [vmem:[#allocation2 + $0x8] sm:$0xff] }
  0x37   : > { %v431_v50 = vpack.c.bf16 %v421_v45, %v419_v44  ;;  %v441_v32 = vld [vmem:[#allocation2 + $0x48] sm:$0xff] }
  0x38   : > { %v411_v56 = vmul.f32 %v387_v53, %v338_v21  ;;  %v413_v57 = vmul.f32 %v387_v53, %v340_v23  ;;  %v426_v58 = vpack.c.bf16 %v412_v55, %v410_v54  ;;  %v440_v23 = vld [vmem:[#allocation2 + $0x40] sm:$0xff]  ;;  %v437_v44 = vld [vmem:[#allocation2 + $0x28] sm:$0xff] }
  0x3a   : > { %v427_v59 = vpack.c.bf16 %v413_v57, %v411_v56 }
  0x44   : > { %457 = vmatmul.bf16.gmra.mxu0 %v424_v46  ;;  %472 = vmatmul.bf16.gmra.mxu2 %v430_v47 }
  0x46   : > { %491 = vmatmul.bf16.gmra.mxu1 %v425_v49  ;;  %506 = vmatmul.bf16.gmra.mxu3 %v431_v50 }
  0x54   : > { %462 = vmatmul.bf16.gmra.mxu0 %v426_v58 }
  0x56   : > { %496 = vmatmul.bf16.gmra.mxu1 %v427_v59 }
  0xb1   : > { %v453_v6 = vpop.f32.mrf.mxu0 }
  0xb3   : > { %v487_v60 = vpop.f32.mrf.mxu1 }
  0xb4   : > { %v488_v61 = vadd.f32 %v487_v60, %v453_v6 }
  0xb6   : > { %v512_v62 = vadd.f32 %v488_v61, %v432_v11 }
  0xb7   : > { %v468_v63 = vpop.f32.mrf.mxu2 }
  0xb8   : > { %523 = vst.msk [vmem:[#allocation2] sm:$0xff] %vm262_vm15, %v512_v62 }
  0xb9   : > { %v455_v0 = vpop.f32.mrf.mxu0  ;;  %v502_v2 = vpop.f32.mrf.mxu3 }
  0xba   : > { %v503_v3 = vadd.f32 %v502_v2, %v468_v63 }
  0xbb   : > { %v489_v5 = vpop.f32.mrf.mxu1 }
  0xbc   : > { %v518_v7 = vadd.f32 %v503_v3, %v438_v1  ;;  %v490_v8 = vadd.f32 %v489_v5, %v455_v0 }
  0xbe   : > { %529 = vst.msk [vmem:[#allocation2 + $0x30] sm:$0xff] %vm262_vm15, %v518_v7  ;;  %v513_v9 = vadd.f32 %v490_v8, %v433_v4 }
  0xbf   : > { %v470_v36 = vpop.f32.mrf.mxu2  ;;  %v536_v49 = vld [vmem:[#allocation2] sm:$0xff] }
  0xc0   : > { %524 = vst.msk [vmem:[#allocation2 + $0x8] sm:$0xff] %vm262_vm15, %v513_v9 }
  0xc1   : > { %v458_v10 = vpop.f32.mrf.mxu0  ;;  %v504_v13 = vpop.f32.mrf.mxu3 }
  0xc2   : > { %v505_v14 = vadd.f32 %v504_v13, %v470_v36 }
  0xc3   : > { %v492_v16 = vpop.f32.mrf.mxu1 }
  0xc4   : > { %v519_v17 = vadd.f32 %v505_v14, %v439_v12  ;;  %v493_v18 = vadd.f32 %v492_v16, %v458_v10 }
  0xc5   : > { %v542_v53 = vld [vmem:[#allocation2 + $0x30] sm:$0xff] }
  0xc6   : > { %530 = vst.msk [vmem:[#allocation2 + $0x38] sm:$0xff] %vm262_vm15, %v519_v17  ;;  %v514_v20 = vadd.f32 %v493_v18, %v434_v15 }
  0xc7   : > { %v473_v21 = vpop.f32.mrf.mxu2 }
  0xc8   : > { %525 = vst.msk [vmem:[#allocation2 + $0x10] sm:$0xff] %vm262_vm15, %v514_v20 }
  0xc9   : > { %v460_v22 = vpop.f32.mrf.mxu0  ;;  %v507_v24 = vpop.f32.mrf.mxu3 }
  0xca   : > { %v508_v19 = vadd.f32 %v507_v24, %v473_v21 }
  0xcb   : > { %v494_v26 = vpop.f32.mrf.mxu1 }
  0xcc   : > { %v520_v27 = vadd.f32 %v508_v19, %v440_v23  ;;  %v495_v28 = vadd.f32 %v494_v26, %v460_v22 }
  0xce   : > { %531 = vst.msk [vmem:[#allocation2 + $0x40] sm:$0xff] %vm262_vm15, %v520_v27  ;;  %v515_v29 = vadd.f32 %v495_v28, %v435_v25 }
  0xcf   : > { %v475_v30 = vpop.f32.mrf.mxu2  ;;  %v538_v50 = vld [vmem:[#allocation2 + $0x10] sm:$0xff] }
  0xd0   : > { %526 = vst.msk [vmem:[#allocation2 + $0x18] sm:$0xff] %vm262_vm15, %v515_v29 }
  0xd1   : > { %v463_v31 = vpop.f32.mrf.mxu0  ;;  %v509_v33 = vpop.f32.mrf.mxu3 }
  0xd2   : > { %v510_v34 = vadd.f32 %v509_v33, %v475_v30 }
  0xd3   : > { %v497_v37 = vpop.f32.mrf.mxu1 }
  0xd4   : > { %v521_v38 = vadd.f32 %v510_v34, %v441_v32  ;;  %v498_v39 = vadd.f32 %v497_v37, %v463_v31 }
  0xd5   : > { %v544_v40 = vld [vmem:[#allocation2 + $0x40] sm:$0xff] }
  0xd6   : > { %v546_v41 = vmax.f32 %v544_v40, 1e-08  ;;  %532 = vst.msk [vmem:[#allocation2 + $0x48] sm:$0xff] %vm262_vm15, %v521_v38  ;;  %v516_v42 = vadd.f32 %v498_v39, %v436_v35 }
  0xd7   : > { %566 = vst.msk [vmem:[%s234_s21] sm:$0xff] %vm262_vm15, %v544_v40 }
  0xd8   : > { %839 = vrcp.f32 %v546_v41  ;;  %527 = vst.msk [vmem:[#allocation2 + $0x20] sm:$0xff] %vm262_vm15, %v516_v42 }
  0xd9   : > { %v465_v43 = vpop.f32.mrf.mxu0 }
  0xdb   : > { %v499_v45 = vpop.f32.mrf.mxu1 }
  0xdc   : > { %v500_v46 = vadd.f32 %v499_v45, %v465_v43 }
  0xdd   : > { %v545_v47 = vld [vmem:[#allocation2 + $0x48] sm:$0xff] }
  0xde   : > { %v840_v48 = vpop.eup %839  ;;  %v547_v51 = vmax.f32 %v545_v47, 1e-08  ;;  %v517_v52 = vadd.f32 %v500_v46, %v437_v44  ;;  %567 = vst.msk [vmem:[%s234_s21 + $0x8] sm:$0xff] %vm262_vm15, %v545_v47 }
  0xdf   : > { %v540_v54 = vld [vmem:[#allocation2 + $0x20] sm:$0xff]  ;;  %v550_v55 = vmul.f32 %v840_v48, %v536_v49  ;;  %v552_v56 = vmul.f32 %v840_v48, %v538_v50 }
  0xe0   : > { %870 = shalt.err (!%p867_p5)
}
  0xe1   : > { %s957_s10 = smov 128   ;;  %s958_s11 = smov 8   ;;  %841 = vrcp.f32 %v547_v51  ;;  %v554_v57 = vmul.f32 %v840_v48, %v540_v54  ;;  %528 = vst.msk [vmem:[#allocation2 + $0x28] sm:$0xff] %vm262_vm15, %v517_v52  ;;  %v556_v58 = vmul.f32 %v840_v48, %v542_v53  ;;  %v537_v6 = vld [vmem:[#allocation2 + $0x8] sm:$0xff]  ;;  %v539_v11 = vld [vmem:[#allocation2 + $0x18] sm:$0xff] }
  0xe2   : > { %776 = dma.vmem_to_hbm [thread:$0]  (%p1019_p4), %s1119_s23, 256, %s1121_s26, %s574_s28, %s957_s10, %s957_s10, %s958_s11   ;;  %v543_v60 = vld [vmem:[#allocation2 + $0x38] sm:$0xff] }
  0xe3   : > { %s227_s18 = scalar_lea.vmem [#allocation3], %s751_s27  ;;  %s771_s19 = sshll.u32 %s945_s15, 6 }
  0xe4   : > { %558 = vst.msk [vmem:[%s227_s18] sm:$0xff] %vm262_vm15, %v550_v55  ;;  %s587_s23 = scalar_lea.hbm %s1194_s2, %s771_s19  ;;  %s588_s15 = sshll.u32 %s227_s18, 4  ;;  %s589_s15 = int_to_ptr.vmem [resolvable:$true] %s588_s15 }
  0xe5   : > { %560 = vst.msk [vmem:[%s227_s18 + $0x10] sm:$0xff] %vm262_vm15, %v552_v56  ;;  %s590_s26 = sshll.u32 %s587_s23, 4  ;;  %s569_s27 = scalar_lea.sflag [#allocation4], %s1107_s8  ;;  %s591_s26 = int_to_ptr.hbm [resolvable:$true] %s590_s26 }
  0xe6   : > { %562 = vst.msk [vmem:[%s227_s18 + $0x20] sm:$0xff] %vm262_vm15, %v554_v57  ;;  %s885_s28 = sshra.s32 %s591_s26, 4  ;;  %s891_s6 = scalar_lea.hbm %s1194_s2, 128  ;;  %s886_s28 = int_to_ptr.hbm [resolvable:$true] %s885_s28 }
  0xe7   : > { %564 = vst.msk [vmem:[%s227_s18 + $0x30] sm:$0xff] %vm262_vm15, %v556_v58  ;;  %v842_v59 = vpop.eup %841  ;;  %s887_s30 = scalar_lea.hbm %s886_s28, 64  ;;  %p892_p10 = scmp.lt.s32.totalorder %s886_s28, %s1194_s2 }
  0xe8   : > { %v541_v61 = vld [vmem:[#allocation2 + $0x28] sm:$0xff]  ;;  %v551_v62 = vmul.f32 %v842_v59, %v537_v6  ;;  %v553_v63 = vmul.f32 %v842_v59, %v539_v11  ;;  %v557_v1 = vmul.f32 %v842_v59, %v543_v60  ;;  %p888_p6 = scmp.ne.s32.totalorder %s886_s28, %s887_s30  ;;  %p893_p11 = scmp.lt.s32.totalorder %s891_s6, %s887_s30 }
  0xe9   : > { %v555_v0 = vmul.f32 %v842_v59, %v541_v61 }
  0xea   : > { %559 = vst.msk [vmem:[%s227_s18 + $0x8] sm:$0xff] %vm262_vm15, %v551_v62  ;;  %p889_p7 = pnand %p888_p6, %p1019_p4  ;;  %p894_p12 = por %p893_p11, %p892_p10 }
  0xeb   : > { %561 = vst.msk [vmem:[%s227_s18 + $0x18] sm:$0xff] %vm262_vm15, %v553_v63 }
  0xec   : > { %563 = vst.msk [vmem:[%s227_s18 + $0x28] sm:$0xff] %vm262_vm15, %v555_v0  ;;  %p890_p9 = pneg %p889_p7 }
  0xed   : > { %565 = vst.msk [vmem:[%s227_s18 + $0x38] sm:$0xff] %vm262_vm15, %v557_v1 }
  0xee   : > { %p895_p13 = pnand %p894_p12, %p890_p9 }
  0xf0   : > { %898 = shalt.err (!%p895_p13)
}
  0xf1   : > { %775 = dma.vmem_to_hbm [thread:$0]  (%p1019_p4), %s589_s15, 1024, %s591_s26, %s569_s27, %s957_s10, %s957_s10, %s958_s11  }
  0xf2 PF: > { %p786_p0 = scmp.ge.s32.totalorder %s953_s17, 2  ;;  %s624_s8 = sand.u32 1, %s933_s12  }
  0xf3   : > { %s625_s18 = scalar_lea.sflag [#allocation4], %s624_s8 }
  0xf4   : > { %p780_p1 = pnand %p786_p0, %p1026_p8 }
  0xf6   : > { %p781_p2 = pneg %p780_p1 }
  0xf8   : > { %924 = dma.done.wait (%p781_p2), %s625_s18, 1024  }
  0xf9   : > { %926 = vsyncadd (%p781_p2), %s625_s18, 4294966272  ;;  %s635_s19 = scalar_lea.sflag [#allocation6], %s624_s8 }
  0xfa   : > { %928 = dma.done.wait (%p781_p2), %s635_s19, 256  }
  0xfb   : > { %930 = vsyncadd (%p781_p2), %s635_s19, 4294967040  ;;  %s20_s17 = sadd.s32 1, %s953_s17   ;;  %s1202_s12 = smov %s937_s13 }
  0xfc   : > { %p17_p3 = scmp.ge.s32.totalorder %s20_s17, 4   ;;  %s1203_s13 = smov %s941_s14 }
  0xfd   : > { %s1204_s14 = smov %s1032_s25  ;;  %s1205_s15 = smov %s949_s16 }
  0xfe   : > { %s1206_s16 = smov %s1208_s20  ;;  %19 = sbr.rel (!%p17_p3) target bundleno = 6 (0x6), region = 91 }
 0x103   :  { %641 = vsyncpa [#allocation4], 1 }
 0x104   :  { %643 = vsyncpa [#allocation4 + $0x1], 1 }
 0x105   :  { %644 = vsyncpa [#allocation6], 1 }
 0x106   :  { %646 = vsyncpa [#allocation6 + $0x1], 1 }

</bundles_post_ra>
